<compile_context>
chip_gen: v6e
topology: v6e:2x2x1
jax: 0.10.0
libtpu: 0.0.40
codegen_flags: <defaults>
</compile_context>

<pallas_src>
import math

import jax
import jax.numpy as jnp
from jax.experimental import pallas as pl
from jax.experimental.pallas import tpu as pltpu


def _assign_kernel(c_ref, d_ref, ac_ref, ad_ref, keep_ref, bias_ref, oc_ref, od_ref):
    """Fused select -> affine f -> scatter-assign on the box abstract state.

    c_ref, d_ref   : (B, D)  centers / widths of the abstract state
    ac_ref, ad_ref : (D, D)  folded gather . W^T . scatter (centers) and
                             gather . |W|^T . scatter (widths); zero outside target cols
    keep_ref       : (1, D)  1.0 on non-target columns, 0.0 on target columns
    bias_ref       : (1, D)  bias scattered onto target columns, 0.0 elsewhere
    oc_ref, od_ref : (B, D)  updated centers / widths
    """
    c = c_ref[...]
    d = d_ref[...]
    keep = keep_ref[...]

    # One lane-dense MXU contraction per field (contraction depth = D).  The result
    # is nonzero only on the target columns; all other columns pass through via the
    # keep-mask, so both stores below are full-tile stores.
    fc = jnp.dot(c, ac_ref[...], preferred_element_type=jnp.float32)
    fd = jnp.dot(d, ad_ref[...], preferred_element_type=jnp.float32)

    oc_ref[...] = (c * keep + fc + bias_ref[...]).astype(oc_ref.dtype)
    od_ref[...] = (d * keep + fd).astype(od_ref.dtype)


def assign_forward(states, weight, bias, target_idx, arg_idx):
    """Pallas equivalent of Assign(target_idx, arg_idx, f=Linear(W, b)).forward(states).

    states: dict with 'c' and 'delta', both (B, D) float32.
    Returns a new states dict: target columns overwritten by f applied to the arg
    columns (box semantics: c -> c_sel @ W^T + b, delta -> delta_sel @ |W|^T).
    """
    c = states["c"]
    delta = states["delta"]
    b_sz, d_sz = c.shape
    t_idx = tuple(int(i) for i in target_idx)
    a_idx = tuple(int(i) for i in arg_idx)
    t_n, a_n = len(t_idx), len(a_idx)
    assert weight.shape == (t_n, a_n)
    assert bias.shape == (t_n,)
    dtype = c.dtype

    # ---- static folding (depends only on module parameters; exact placement, no matmul) ----
    a_idx_arr = jnp.asarray(a_idx)
    a_c = jnp.zeros((d_sz, d_sz), dtype)
    a_d = jnp.zeros((d_sz, d_sz), dtype)
    for j, t in enumerate(t_idx):
        a_c = a_c.at[a_idx_arr, t].set(weight[j, :])
        a_d = a_d.at[a_idx_arr, t].set(jnp.abs(weight[j, :]))
    t_idx_arr = jnp.asarray(t_idx)
    keep = jnp.ones((1, d_sz), dtype).at[0, t_idx_arr].set(0.0)       # (1, D)
    bias_row = jnp.zeros((1, d_sz), dtype).at[0, t_idx_arr].set(bias)  # (1, D)

    new_c, new_delta = pl.pallas_call(
        _assign_kernel,
        out_shape=(jax.ShapeDtypeStruct((b_sz, d_sz), dtype),
                   jax.ShapeDtypeStruct((b_sz, d_sz), dtype)),
        compiler_params=pltpu.CompilerParams(vmem_limit_bytes=32 * 1024 * 1024),
    )(c, delta, a_c, a_d, keep, bias_row)
    return {"c": new_c, "delta": new_delta}


def assign_reference(states, weight, bias, target_idx, arg_idx):
    """Plain-JAX reference with the same semantics (select -> f -> scatter-assign)."""
    c = states["c"]
    delta = states["delta"]
    a = jnp.asarray(arg_idx)
    t = jnp.asarray(target_idx)
    c_sel = c[:, a]
    d_sel = delta[:, a]
    res_c = jnp.matmul(c_sel, weight.T, precision="highest") + bias
    res_d = jnp.matmul(d_sel, jnp.abs(weight).T, precision="highest")
    return {"c": c.at[:, t].set(res_c), "delta": delta.at[:, t].set(res_d)}


def make_linear_params(key, in_features, out_features):
    """Deterministic init matching nn.Linear.reset_parameters()."""
    stdv = 1.0 / math.sqrt(in_features)
    kw, kb = jax.random.split(key)
    w = jax.random.uniform(kw, (out_features, in_features),
                           minval=-stdv, maxval=stdv, dtype=jnp.float32)
    b = jax.random.uniform(kb, (out_features,),
                           minval=-stdv, maxval=stdv, dtype=jnp.float32)
    return w, b


if __name__ == "__main__":
    key = jax.random.PRNGKey(0)
    k_p, k_c, k_d = jax.random.split(key, 3)

    # Small shapes consistent with the module: B=8 abstract states, D=16 program
    # variables; the assignment writes variables [0, 2] from variables [1, 3, 5, 7].
    batch, n_vars = 8, 16
    target_idx = [0, 2]
    arg_idx = [1, 3, 5, 7]

    weight, bias = make_linear_params(k_p, len(arg_idx), len(target_idx))

    c = jax.random.normal(k_c, (batch, n_vars), dtype=jnp.float32)
    delta = jnp.abs(jax.random.normal(k_d, (batch, n_vars), dtype=jnp.float32))
    states = {"c": c, "delta": delta}

    out = assign_forward(states, weight, bias, target_idx, arg_idx)
    out = jax.block_until_ready(out)
    ref = assign_reference(states, weight, bias, target_idx, arg_idx)

    assert out["c"].shape == ref["c"].shape, (out["c"].shape, ref["c"].shape)
    assert out["delta"].shape == ref["delta"].shape, (out["delta"].shape, ref["delta"].shape)
    assert jnp.allclose(out["c"], ref["c"], atol=1e-5, rtol=1e-5), \
        float(jnp.max(jnp.abs(out["c"] - ref["c"])))
    assert jnp.allclose(out["delta"], ref["delta"], atol=1e-5, rtol=1e-5), \
        float(jnp.max(jnp.abs(out["delta"] - ref["delta"])))

    print("KERNEL_OK")
</pallas_src>

<mosaic_0001>
module attributes {stable_mosaic.version = 11 : i64} {
  func.func @_assign_kernel(%arg0: memref<8x16xf32, #tpu.memory_space<vmem>>, %arg1: memref<8x16xf32, #tpu.memory_space<vmem>>, %arg2: memref<16x16xf32, #tpu.memory_space<vmem>>, %arg3: memref<16x16xf32, #tpu.memory_space<vmem>>, %arg4: memref<1x16xf32, #tpu.memory_space<vmem>>, %arg5: memref<1x16xf32, #tpu.memory_space<vmem>>, %arg6: memref<8x16xf32, #tpu.memory_space<vmem>>, %arg7: memref<8x16xf32, #tpu.memory_space<vmem>>) attributes {dimension_semantics = [], scalar_prefetch = 0 : i64, scratch_operands = 0 : i64, tpu.core_type = #tpu.core_type<tc>} {
    %c0 = arith.constant 0 : index
    %c0_0 = arith.constant 0 : index
    %0 = vector.load %arg0[%c0, %c0_0] : memref<8x16xf32, #tpu.memory_space<vmem>>, vector<8x16xf32>
    %c0_1 = arith.constant 0 : index
    %c0_2 = arith.constant 0 : index
    %1 = vector.load %arg1[%c0_1, %c0_2] : memref<8x16xf32, #tpu.memory_space<vmem>>, vector<8x16xf32>
    %c0_3 = arith.constant 0 : index
    %c0_4 = arith.constant 0 : index
    %2 = vector.load %arg4[%c0_3, %c0_4] : memref<1x16xf32, #tpu.memory_space<vmem>>, vector<1x16xf32>
    %c0_5 = arith.constant 0 : index
    %c0_6 = arith.constant 0 : index
    %3 = vector.load %arg2[%c0_5, %c0_6] : memref<16x16xf32, #tpu.memory_space<vmem>>, vector<16x16xf32>
    %cst = arith.constant dense<0.000000e+00> : vector<8x16xf32>
    %4 = tpu.matmul %0, %3, %cst {dimension_numbers = #tpu.dot_dimension_numbers<[1], [0], [0], [1], [0, 0, 1, 1], [], []>} : vector<8x16xf32>, vector<16x16xf32>, vector<8x16xf32> -> vector<8x16xf32>
    %c0_7 = arith.constant 0 : index
    %c0_8 = arith.constant 0 : index
    %5 = vector.load %arg3[%c0_7, %c0_8] : memref<16x16xf32, #tpu.memory_space<vmem>>, vector<16x16xf32>
    %cst_9 = arith.constant dense<0.000000e+00> : vector<8x16xf32>
    %6 = tpu.matmul %1, %5, %cst_9 {dimension_numbers = #tpu.dot_dimension_numbers<[1], [0], [0], [1], [0, 0, 1, 1], [], []>} : vector<8x16xf32>, vector<16x16xf32>, vector<8x16xf32> -> vector<8x16xf32>
    %7 = vector.broadcast %2 : vector<1x16xf32> to vector<8x16xf32>
    %8 = arith.mulf %0, %7 : vector<8x16xf32>
    %9 = arith.addf %8, %4 : vector<8x16xf32>
    %c0_10 = arith.constant 0 : index
    %c0_11 = arith.constant 0 : index
    %10 = vector.load %arg5[%c0_10, %c0_11] : memref<1x16xf32, #tpu.memory_space<vmem>>, vector<1x16xf32>
    %11 = vector.broadcast %10 : vector<1x16xf32> to vector<8x16xf32>
    %12 = arith.addf %9, %11 : vector<8x16xf32>
    %c0_12 = arith.constant 0 : index
    %c0_13 = arith.constant 0 : index
    %13 = vector.load %arg6[%c0_12, %c0_13] : memref<8x16xf32, #tpu.memory_space<vmem>>, vector<8x16xf32>
    tpu.vector_store %arg6[%c0_12, %c0_13], %12 {strides = array<i32>} : memref<8x16xf32, #tpu.memory_space<vmem>>, vector<8x16xf32>,
    %14 = vector.broadcast %2 : vector<1x16xf32> to vector<8x16xf32>
    %15 = arith.mulf %1, %14 : vector<8x16xf32>
    %16 = arith.addf %15, %6 : vector<8x16xf32>
    %c0_14 = arith.constant 0 : index
    %c0_15 = arith.constant 0 : index
    %17 = vector.load %arg7[%c0_14, %c0_15] : memref<8x16xf32, #tpu.memory_space<vmem>>, vector<8x16xf32>
    tpu.vector_store %arg7[%c0_14, %c0_15], %16 {strides = array<i32>} : memref<8x16xf32, #tpu.memory_space<vmem>>, vector<8x16xf32>,
    return
  }
}

</mosaic_0001>

<bundles_post_ra>
// kernel: tpu_custom_call.1
= control target key start
LH: loop header
LB: loop body
LE: loop exit
PB: predicated region body
PF: predicated region fallthrough
CT: control target
= control target key end

     0   :  { %13 = vsyncpa [#allocation3], 0  ;;  %s525_s0 = inlined_call_operand.hbm [shape: f32[8,16], index: 0, kind: input, shape index: {}]   ;;  %s526_s1 = inlined_call_operand.hbm [shape: f32[8,16], index: 1, kind: input, shape index: {}]   ;;  %s527_s2 = inlined_call_operand.hbm [shape: f32[16,16], index: 2, kind: input, shape index: {}]   ;;  %s528_s3 = inlined_call_operand.hbm [shape: f32[16,16], index: 3, kind: input, shape index: {}]   ;;  %s529_s4 = inlined_call_operand.vmem [shape: f32[1,16], index: 4, kind: input, shape index: {}]   ;;  %s530_s5 = inlined_call_operand.vmem [shape: f32[1,16], index: 5, kind: input, shape index: {}]   ;;  %s531_s6 = inlined_call_operand.hbm [shape: f32[8,16], index: 6, kind: output, shape index: {0}]   ;;  %s532_s7 = inlined_call_operand.hbm [shape: f32[8,16], index: 7, kind: output, shape index: {1}]  }
   0x1   :  { %14 = vsyncpa [#allocation6], 0 }
   0x2   :  { %15 = vsyncpa [#allocation9], 0 }
   0x3   :  { %16 = vsyncpa [#allocation4], 0 }
   0x4   :  { %17 = vsyncpa [#allocation12], 0  ;;  %s447_s24 = smov [#allocation5]   ;;  %s448_s26 = smov [#allocation2]  }
   0x5   :  { %s34_s25 = sshll.u32 %s447_s24, 4  ;;  %s24_s27 = sshll.u32 %s448_s26, 4  ;;  %s35_s25 = int_to_ptr.vmem [resolvable:$true] %s34_s25  ;;  %s25_s27 = int_to_ptr.vmem [resolvable:$true] %s24_s27 }
   0x6   :  { %s325_s28 = scalar_lea.vmem %s35_s25, 128  ;;  %p330_p1 = scmp.lt.s32.totalorder %s35_s25, %s35_s25 }
   0x7   :  { %p326_p0 = scmp.ne.s32.totalorder %s35_s25, %s325_s28  ;;  %p331_p2 = scmp.lt.s32.totalorder %s325_s28, %s325_s28 }
   0x9   :  { %p332_p3 = por %p331_p2, %p330_p1 }
   0xb   :  { %p333_p4 = pnand %p332_p3, %p326_p0 }
   0xd   :  { %336 = shalt.err (!%p333_p4)
}
   0xe   :  { %37 = dma.hbm_to_vmem [thread:$0]  %s526_s1, 128, %s35_s25, [#allocation6]  }
   0xf   :  { %s345_s8 = scalar_lea.vmem %s25_s27, 128  ;;  %p350_p6 = scmp.lt.s32.totalorder %s25_s27, %s25_s27 }
  0x10   :  { %p346_p5 = scmp.ne.s32.totalorder %s25_s27, %s345_s8  ;;  %p351_p7 = scmp.lt.s32.totalorder %s345_s8, %s345_s8 }
  0x12   :  { %p352_p8 = por %p351_p7, %p350_p6 }
  0x14   :  { %p353_p9 = pnand %p352_p8, %p346_p5 }
  0x16   :  { %356 = shalt.err (!%p353_p9)
}
  0x17   :  { %27 = dma.hbm_to_vmem [thread:$0]  %s525_s0, 128, %s25_s27, [#allocation3]  }
  0x18   :  { %s449_s11 = smov [#allocation7]  }
  0x19   :  { %s43_s12 = sshll.u32 %s449_s11, 4  ;;  %s44_s12 = int_to_ptr.vmem [resolvable:$true] %s43_s12 }
  0x1a   :  { %s365_s13 = scalar_lea.vmem %s44_s12, 256  ;;  %p370_p11 = scmp.lt.s32.totalorder %s44_s12, %s44_s12 }
  0x1b   :  { %p366_p10 = scmp.ne.s32.totalorder %s44_s12, %s365_s13  ;;  %p371_p12 = scmp.lt.s32.totalorder %s365_s13, %s365_s13 }
  0x1d   :  { %p372_p13 = por %p371_p12, %p370_p11 }
  0x1f   :  { %p373_p0 = pnand %p372_p13, %p366_p10 }
  0x21   :  { %376 = shalt.err (!%p373_p0)
}
  0x22   :  { %s450_s1 = smov 128   ;;  %s451_s14 = smov 8  }
  0x23   :  { %49 = dma.hbm_to_vmem [thread:$0]  %s527_s2, 256, %s44_s12, [#allocation6], %s450_s1, %s450_s1, %s451_s14  }
  0x24   :  { %s452_s17 = smov [#allocation8]  }
  0x25   :  { %s55_s18 = sshll.u32 %s452_s17, 4  ;;  %s56_s18 = int_to_ptr.vmem [resolvable:$true] %s55_s18 }
  0x26   :  { %s385_s0 = scalar_lea.vmem %s56_s18, 256  ;;  %p390_p2 = scmp.lt.s32.totalorder %s56_s18, %s56_s18 }
  0x27   :  { %p386_p1 = scmp.ne.s32.totalorder %s56_s18, %s385_s0  ;;  %p391_p3 = scmp.lt.s32.totalorder %s385_s0, %s385_s0 }
  0x29   :  { %p392_p4 = por %p391_p3, %p390_p2 }
  0x2b   :  { %p393_p5 = pnand %p392_p4, %p386_p1 }
  0x2d   :  { %396 = shalt.err (!%p393_p5)
}
  0x2e   :  { %61 = dma.hbm_to_vmem [thread:$0]  %s528_s3, 256, %s56_s18, [#allocation9], %s450_s1, %s450_s1, %s451_s14  }
  0x2f   :  { %437 = dma.done.wait [#allocation3], 128  }
  0x30   :  { %438 = vsyncadd [#allocation3], 4294967168 }
  0x31   :  { %439 = dma.done.wait [#allocation6], 384  }
  0x32   :  { %440 = vsyncadd [#allocation6], 4294966912 }
  0x33   :  { %441 = dma.done.wait [#allocation9], 256  }
  0x34   :  { %442 = vsyncadd [#allocation9], 4294967040  ;;  %v453_v0 = vmov 0.0   ;;  %vm454_vm0 = vmmov 0   ;;  %v82_v1 = vld [vmem:[#allocation7 + $0x8] sm:$0xff]  ;;  %v158_v2 = vld [vmem:[#allocation8 + $0x8] sm:$0xff] }
  0x35   :  { %293 = vmatprep.subr.mxu0 %v453_v0  ;;  %300 = vmatprep.subr.mxu1 %v453_v0  ;;  %v81_v3 = vld [vmem:[#allocation7] sm:$0xff]  ;;  %v157_v4 = vld [vmem:[#allocation8] sm:$0xff]  ;;  %vm83_vm1 = vcmask 130048   ;;  %v79_v6 = vld [vmem:[#allocation5] sm:$0xff]  ;;  %s455_s21 = smov [#allocation11]   ;;  %s456_s25 = smov [#allocation10]  }
  0x36   :  { %297 = vmatprep.mubr.msk.f32.mxu0 %vm454_vm0, %v453_v0  ;;  %304 = vmatprep.mubr.msk.f32.mxu1 %vm454_vm0, %v453_v0  ;;  %v78_v5 = vld [vmem:[#allocation2] sm:$0xff]  ;;  %s268_s22 = sshll.u32 %s455_s21, 4  ;;  %s258_s26 = sshll.u32 %s456_s25, 4  ;;  %s269_s22 = int_to_ptr.vmem [resolvable:$true] %s268_s22  ;;  %s259_s26 = int_to_ptr.vmem [resolvable:$true] %s258_s26 }
  0x37   :  { %294 = vmatpush3.msra.mxu0 %v82_v1  ;;  %301 = vmatpush3.msra.mxu1 %v158_v2  ;;  %v285_v7 = vld [vmem:[%s529_s4] ss:$0 sm:$0xff]  ;;  %s397_s4 = scalar_lea.vmem %s269_s22, 128  ;;  %p402_p7 = scmp.lt.s32.totalorder %s269_s22, %s269_s22 }
  0x38   :  { %295 = vmatprep.subr.mxu0 %v453_v0  ;;  %302 = vmatprep.subr.mxu1 %v453_v0  ;;  %v238_v8 = vmul.f32 %v285_v7, %v78_v5  ;;  %v249_v9 = vmul.f32 %v285_v7, %v79_v6  ;;  %v286_v11 = vld [vmem:[%s530_s5] ss:$0 sm:$0xff]  ;;  %p398_p6 = scmp.ne.s32.totalorder %s269_s22, %s397_s4  ;;  %p403_p8 = scmp.lt.s32.totalorder %s397_s4, %s397_s4 }
  0x39   :  { %296 = vmatpush3.msra.mxu0 %v81_v3  ;;  %303 = vmatpush3.msra.mxu1 %v157_v4 }
  0x3a   :  { %298 = vmatmul.mubr.msk.f32.vlgmr.msra.gmra.mxu0 %vm83_vm1, %v78_v5  ;;  %305 = vmatmul.mubr.msk.f32.vlgmr.msra.gmra.mxu1 %vm83_vm1, %v79_v6  ;;  %p404_p9 = por %p403_p8, %p402_p7 }
  0x3c   :  { %p405_p10 = pnand %p404_p9, %p398_p6 }
  0xfa   :  { %v153_v10 = vpop.f32.mrf.mxu0  ;;  %v228_v12 = vpop.f32.mrf.mxu1 }
  0xfb   :  { %v239_v13 = vadd.f32 %v238_v8, %v153_v10  ;;  %v250_v14 = vadd.f32 %v249_v9, %v228_v12 }
  0xfc   :  { %v299_v15 = vpop.f32.mrf.mxu0  ;;  %v306_v16 = vpop.f32.mrf.mxu1 }
  0xfd   :  { %v247_v17 = vadd.f32 %v286_v11, %v239_v13  ;;  %251 = vst.msk [vmem:[#allocation11] sm:$0xff] %vm83_vm1, %v250_v14 }
  0xfe   :  { %408 = shalt.err (!%p405_p10)
}
  0xff   :  { %271 = dma.vmem_to_hbm [thread:$0]  %s269_s22, 128, %s532_s7, [#allocation12]   ;;  %248 = vst.msk [vmem:[#allocation10] sm:$0xff] %vm83_vm1, %v247_v17 }
 0x100   :  { %s417_s28 = scalar_lea.vmem %s259_s26, 128  ;;  %p422_p12 = scmp.lt.s32.totalorder %s259_s26, %s259_s26 }
 0x101   :  { %p418_p11 = scmp.ne.s32.totalorder %s259_s26, %s417_s28  ;;  %p423_p13 = scmp.lt.s32.totalorder %s417_s28, %s417_s28 }
 0x103   :  { %p424_p0 = por %p423_p13, %p422_p12 }
 0x105   :  { %p425_p1 = pnand %p424_p0, %p418_p11 }
 0x107   :  { %428 = shalt.err (!%p425_p1)
}
 0x108   :  { %261 = dma.vmem_to_hbm [thread:$0]  %s259_s26, 128, %s531_s6, [#allocation4]  }
 0x109   :  { %443 = dma.done.wait [#allocation4], 128  }
 0x10a   :  { %444 = vsyncadd [#allocation4], 4294967168 }
 0x10b   :  { %445 = dma.done.wait [#allocation12], 128  }
 0x10c   :  { %446 = vsyncadd [#allocation12], 4294967168 }
 0x10d   :  { %278 = vsyncpa [#allocation3], 1 }
 0x10e   :  { %279 = vsyncpa [#allocation6], 1 }
 0x10f   :  { %280 = vsyncpa [#allocation9], 1 }
 0x110   :  { %281 = vsyncpa [#allocation4], 1 }
 0x111   :  { %282 = vsyncpa [#allocation12], 1 }

</bundles_post_ra>
